<compile_context>
chip_gen: v7x
topology: tpu7x:2x2x1
jax: 0.10.0
libtpu: 0.0.40
codegen_flags: <defaults>
</compile_context>

<pallas_src>
import math
from functools import partial

import jax
import jax.numpy as jnp
from jax.experimental import pallas as pl
from jax.experimental.pallas import tpu as pltpu


def _round_up(x, m):
    return ((x + m - 1) // m) * m


# ----------------------------------------------------------------------------
# Kernel 1: nine scaled rotation blocks r_ab * s, one lane-dense (9, E_pad) out.
# ----------------------------------------------------------------------------
def rotation_kernel(q_ref, o_ref):
    q = q_ref[...]                                  # (4, E_pad)
    q0, q1, q2, q3 = q[0:1], q[1:2], q[2:3], q[3:4]
    m2 = q0 * q0 + q1 * q1 + q2 * q2 + q3 * q3      # modulus^2
    s = jnp.sqrt(m2)                                # modulus
    o_ref[0:1, :] = (m2 - 2.0 * (q2 * q2 + q3 * q3)) * s   # r11*s
    o_ref[1:2, :] = (2.0 * (q1 * q2 - q0 * q3)) * s        # r12*s
    o_ref[2:3, :] = (2.0 * (q1 * q3 + q0 * q2)) * s        # r13*s
    o_ref[3:4, :] = (2.0 * (q1 * q2 + q0 * q3)) * s        # r21*s
    o_ref[4:5, :] = (m2 - 2.0 * (q1 * q1 + q3 * q3)) * s   # r22*s
    o_ref[5:6, :] = (2.0 * (q2 * q3 - q0 * q1)) * s        # r23*s
    o_ref[6:7, :] = (2.0 * (q1 * q3 - q0 * q2)) * s        # r31*s
    o_ref[7:8, :] = (2.0 * (q2 * q3 + q0 * q1)) * s        # r32*s
    o_ref[8:9, :] = (m2 - 2.0 * (q1 * q1 + q2 * q2)) * s   # r33*s


def build_fused_weight(r_w, i_w, j_w, k_w):
    """Fused valid-conv weight W2 of shape (Cy, kH*kW*Cx).

    W2[b*Ci+ci, (kh*kW+kw)*Cx + a*Co+co] = R[a*Co+co, b*Ci+ci, kH-1-kh, kW-1-kw]
    i.e. the flipped / channel-transposed conv_transpose weight, laid out so a
    single matmul against the im2col operand performs the whole convolution.
    """
    Co, Ci, kH, kW = r_w.shape
    E = Co * Ci * kH * kW
    E_pad = _round_up(E, 128)
    q = jnp.stack([r_w, i_w, j_w, k_w], axis=0).reshape(4, E).astype(jnp.float32)
    q = jnp.pad(q, ((0, 0), (0, E_pad - E)))
    out9 = pl.pallas_call(
        rotation_kernel,
        out_shape=jax.ShapeDtypeStruct((9, E_pad), jnp.float32),
    )(q)
    # blocks[a, b, co, ci, kh, kw] = r_{a+1,b+1}[co,ci,kh,kw] * s[co,ci,kh,kw]
    blocks = out9[:, :E].reshape(3, 3, Co, Ci, kH, kW)
    blocksf = blocks[:, :, :, :, ::-1, ::-1]                 # spatial flip
    # axes -> (b, ci, kh, kw, a, co); reshape to (3*Ci, kH*kW*3*Co)
    W2 = jnp.transpose(blocksf, (1, 3, 4, 5, 0, 2)).reshape(
        3 * Ci, kH * kW * 3 * Co)
    return W2


# ----------------------------------------------------------------------------
# Kernel 2: in-kernel padding + im2col into VMEM scratch + ONE MXU matmul.
# ----------------------------------------------------------------------------
def _deconv_kernel(w_ref, x_ref, o_ref, xp_ref, col_ref, *,
                   n_rows, w_in, s_h, k_h, k_w, wp, cx, l_out_pad,
                   mxu_dtype=None):
    # w_ref  : (Cy, K) fused weight, K = k_h*k_w*cx (resident across the grid)
    # x_ref  : (1, cx, n_rows*w_in) unpadded (column-dilated if sW>1) image
    # o_ref  : (1, Cy, l_out_pad)
    # xp_ref : (cx, LP_pad) VMEM scratch, zero-padded / row-dilated image
    # col_ref: (K, l_out_pad) VMEM im2col scratch
    xp_ref[...] = jnp.zeros_like(xp_ref)
    # In-kernel zero-padding + row dilation: copy each input row to its place.
    for h in range(n_rows):
        off = (k_h - 1 + h * s_h) * wp + (k_w - 1)
        xp_ref[:, off:off + w_in] = x_ref[0, :, h * w_in:(h + 1) * w_in]
    # im2col: every kernel tap is a contiguous lane shift of the flat image.
    for t in range(k_h * k_w):
        kh, kw = divmod(t, k_w)
        d = kh * wp + kw
        col_ref[t * cx:(t + 1) * cx, :] = xp_ref[:, d:d + l_out_pad]
    w = w_ref[...]
    cols = col_ref[...]
    if mxu_dtype is not None:           # optional bf16 MXU path (v6e/v7x)
        w = w.astype(mxu_dtype)
        cols = cols.astype(mxu_dtype)
    o_ref[0] = jnp.dot(w, cols,
                       preferred_element_type=jnp.float32).astype(o_ref.dtype)


def bilateral_quaternion_deconv2d(x, r_w, i_w, j_w, k_w,
                                  stride=(1, 1), padding=(0, 0),
                                  mxu_dtype=None):
    """Forward of BilateralQuaternionDeConv2d (weight_init='unitary').

    x: (N, 3*out_channels, H, W) -> (N, 3*in_channels, OH, OW),
    OH = (H-1)*sH - 2*pH + kH (output_padding treated as 0).
    """
    N, Cx, H, W = x.shape
    Co, Ci, kH, kW = r_w.shape
    assert Cx == 3 * Co, "input must have 3*out_channels channels"
    sH, sW = stride
    pH, pW = padding
    Cy = 3 * Ci

    # Fused weight (Cy, kH*kW*Cx).
    W2 = build_fused_weight(r_w, i_w, j_w, k_w)

    # Column dilation only (wrapper); row dilation + zero padding are in-kernel.
    if sW > 1:
        Wd = (W - 1) * sW + 1
        xw = jnp.zeros((N, Cx, H, Wd), x.dtype).at[:, :, :, ::sW].set(x)
    else:
        Wd = W
        xw = x
    Hd = (H - 1) * sH + 1

    WP = Wd + 2 * (kW - 1)              # padded image width
    OHf = Hd + kH - 1                   # full conv_transpose output height
    OWf = Wd + kW - 1                   # full conv_transpose output width
    LOUT = OHf * WP
    LOUT_pad = _round_up(LOUT, 128)     # lane-dense, unmasked output stores
    d_max = (kH - 1) * WP + (kW - 1)
    LP_pad = _round_up(d_max + LOUT_pad, 128)   # padded-image scratch length
    K = kH * kW * Cx

    x_flat = xw.reshape(N, Cx, H * Wd).astype(jnp.float32)

    kernel = partial(_deconv_kernel, n_rows=H, w_in=Wd, s_h=sH,
                     k_h=kH, k_w=kW, wp=WP, cx=Cx, l_out_pad=LOUT_pad,
                     mxu_dtype=mxu_dtype)
    out_flat = pl.pallas_call(
        kernel,
        out_shape=jax.ShapeDtypeStruct((N, Cy, LOUT_pad), jnp.float32),
        grid=(N,),
        in_specs=[
            pl.BlockSpec((Cy, K), lambda n: (0, 0)),           # weight, resident
            pl.BlockSpec((1, Cx, H * Wd), lambda n: (n, 0, 0)),
        ],
        out_specs=pl.BlockSpec((1, Cy, LOUT_pad), lambda n: (n, 0, 0)),
        scratch_shapes=[
            pltpu.VMEM((Cx, LP_pad), jnp.float32),    # padded/dilated image
            pltpu.VMEM((K, LOUT_pad), jnp.float32),   # im2col operand
        ],
        compiler_params=pltpu.CompilerParams(
            dimension_semantics=("parallel",),
            vmem_limit_bytes=64 * 1024 * 1024),
    )(W2, x_flat)

    # Full (padding=0) conv_transpose output, then crop by (pH, pW).  Cropping
    # the full output also handles padding > kernel_size - 1 correctly.
    OH = OHf - 2 * pH
    OW = OWf - 2 * pW
    full = out_flat[:, :, :LOUT].reshape(N, Cy, OHf, WP)
    return full[:, :, pH:pH + OH, pW:pW + OW]


# ----------------------------------------------------------------------------
# Pure-JAX reference (independent scatter formulation of conv_transpose2d).
# ----------------------------------------------------------------------------
def _build_R_ref(q0, q1, q2, q3):
    s = jnp.sqrt(q0 ** 2 + q1 ** 2 + q2 ** 2 + q3 ** 2)
    m2 = s ** 2
    r11 = m2 - 2 * q2 ** 2 - 2 * q3 ** 2
    r12 = 2 * q1 * q2 - 2 * q0 * q3
    r13 = 2 * q1 * q3 + 2 * q0 * q2
    r21 = 2 * q1 * q2 + 2 * q0 * q3
    r22 = m2 - 2 * q1 ** 2 - 2 * q3 ** 2
    r23 = 2 * q2 * q3 - 2 * q0 * q1
    r31 = 2 * q1 * q3 - 2 * q0 * q2
    r32 = 2 * q2 * q3 + 2 * q0 * q1
    r33 = m2 - 2 * q1 ** 2 - 2 * q2 ** 2
    r1 = jnp.concatenate((r11 * s, r12 * s, r13 * s), axis=1)
    r2 = jnp.concatenate((r21 * s, r22 * s, r23 * s), axis=1)
    r3 = jnp.concatenate((r31 * s, r32 * s, r33 * s), axis=1)
    return jnp.concatenate((r1, r2, r3), axis=0)


def bilateral_quaternion_deconv2d_ref(x, r_w, i_w, j_w, k_w,
                                      stride=(1, 1), padding=(0, 0)):
    N, Cx, H, W = x.shape
    Co, Ci, kH, kW = r_w.shape
    sH, sW = stride
    pH, pW = padding
    R = _build_R_ref(r_w, i_w, j_w, k_w)             # (Cx, Cy, kH, kW)
    Cy = R.shape[1]
    full = jnp.zeros((N, Cy, (H - 1) * sH + kH, (W - 1) * sW + kW), jnp.float32)
    for kh in range(kH):
        for kw in range(kW):
            contrib = jnp.einsum('nihw,io->nohw', x, R[:, :, kh, kw])
            full = full.at[:, :, kh:kh + (H - 1) * sH + 1:sH,
                                 kw:kw + (W - 1) * sW + 1:sW].add(contrib)
    OH = (H - 1) * sH - 2 * pH + kH
    OW = (W - 1) * sW - 2 * pW + kW
    return full[:, :, pH:pH + OH, pW:pW + OW]


if __name__ == "__main__":
    key = jax.random.PRNGKey(0)
    in_channels, out_channels, ksize = 4, 4, 3
    N, H, W = 2, 16, 16

    # glorot-uniform init, as in the module's init_parameters()
    limit = math.sqrt(6.0 / (in_channels + out_channels))
    kx, kr, ki, kj, kk = jax.random.split(key, 5)
    wshape = (out_channels, in_channels, ksize, ksize)
    r_w = jax.random.uniform(kr, wshape, jnp.float32, -limit, limit)
    i_w = jax.random.uniform(ki, wshape, jnp.float32, -limit, limit)
    j_w = jax.random.uniform(kj, wshape, jnp.float32, -limit, limit)
    k_w = jax.random.uniform(kk, wshape, jnp.float32, -limit, limit)

    # conv_transpose2d input: channel count = R.shape[0] = 3 * out_channels
    x = jax.random.normal(kx, (N, 3 * out_channels, H, W), dtype=jnp.float32)

    out = bilateral_quaternion_deconv2d(x, r_w, i_w, j_w, k_w,
                                        stride=(1, 1), padding=(0, 0))
    out = jax.block_until_ready(out)

    ref = bilateral_quaternion_deconv2d_ref(x, r_w, i_w, j_w, k_w,
                                            stride=(1, 1), padding=(0, 0))
    assert out.shape == (N, 3 * in_channels, H + ksize - 1, W + ksize - 1), out.shape
    assert jnp.allclose(out, ref, atol=1e-2, rtol=1e-2), (
        "max abs diff = %f" % float(jnp.max(jnp.abs(out - ref))))
    print("KERNEL_OK")
</pallas_src>

<mosaic_0001>
module attributes {stable_mosaic.version = 11 : i64} {
  func.func @rotation_kernel(%arg0: memref<4x256xf32, #tpu.memory_space<vmem>>, %arg1: memref<9x256xf32, #tpu.memory_space<vmem>>) attributes {dimension_semantics = [], scalar_prefetch = 0 : i64, scratch_operands = 0 : i64, tpu.core_type = #tpu.core_type<tc>} {
    %c0 = arith.constant 0 : index
    %c0_0 = arith.constant 0 : index
    %0 = vector.load %arg0[%c0, %c0_0] : memref<4x256xf32, #tpu.memory_space<vmem>>, vector<4x256xf32>
    %1 = vector.extract_strided_slice %0 {offsets = [0, 0], sizes = [1, 256], strides = [1, 1]} : vector<4x256xf32> to vector<1x256xf32>
    %2 = vector.extract_strided_slice %0 {offsets = [1, 0], sizes = [1, 256], strides = [1, 1]} : vector<4x256xf32> to vector<1x256xf32>
    %3 = vector.extract_strided_slice %0 {offsets = [2, 0], sizes = [1, 256], strides = [1, 1]} : vector<4x256xf32> to vector<1x256xf32>
    %4 = vector.extract_strided_slice %0 {offsets = [3, 0], sizes = [1, 256], strides = [1, 1]} : vector<4x256xf32> to vector<1x256xf32>
    %5 = arith.mulf %1, %1 : vector<1x256xf32>
    %6 = arith.mulf %2, %2 : vector<1x256xf32>
    %7 = arith.addf %5, %6 : vector<1x256xf32>
    %8 = arith.mulf %3, %3 : vector<1x256xf32>
    %9 = arith.addf %7, %8 : vector<1x256xf32>
    %10 = arith.mulf %4, %4 : vector<1x256xf32>
    %11 = arith.addf %9, %10 : vector<1x256xf32>
    %12 = math.sqrt %11 : vector<1x256xf32>
    %13 = arith.mulf %3, %3 : vector<1x256xf32>
    %14 = arith.mulf %4, %4 : vector<1x256xf32>
    %15 = arith.addf %13, %14 : vector<1x256xf32>
    %cst = arith.constant 2.000000e+00 : f32
    %16 = vector.broadcast %cst : f32 to vector<1x256xf32>
    %17 = arith.mulf %16, %15 : vector<1x256xf32>
    %18 = arith.subf %11, %17 : vector<1x256xf32>
    %19 = arith.mulf %18, %12 : vector<1x256xf32>
    %c0_1 = arith.constant 0 : index
    %c0_2 = arith.constant 0 : index
    %20 = vector.load %arg1[%c0_1, %c0_2] : memref<9x256xf32, #tpu.memory_space<vmem>>, vector<1x256xf32>
    tpu.vector_store %arg1[%c0_1, %c0_2], %19 {strides = array<i32>} : memref<9x256xf32, #tpu.memory_space<vmem>>, vector<1x256xf32>,
    %21 = arith.mulf %2, %3 : vector<1x256xf32>
    %22 = arith.mulf %1, %4 : vector<1x256xf32>
    %23 = arith.subf %21, %22 : vector<1x256xf32>
    %cst_3 = arith.constant 2.000000e+00 : f32
    %24 = vector.broadcast %cst_3 : f32 to vector<1x256xf32>
    %25 = arith.mulf %24, %23 : vector<1x256xf32>
    %26 = arith.mulf %25, %12 : vector<1x256xf32>
    %c1 = arith.constant 1 : index
    %c0_4 = arith.constant 0 : index
    %27 = vector.load %arg1[%c1, %c0_4] : memref<9x256xf32, #tpu.memory_space<vmem>>, vector<1x256xf32>
    tpu.vector_store %arg1[%c1, %c0_4], %26 {strides = array<i32>} : memref<9x256xf32, #tpu.memory_space<vmem>>, vector<1x256xf32>,
    %28 = arith.mulf %2, %4 : vector<1x256xf32>
    %29 = arith.mulf %1, %3 : vector<1x256xf32>
    %30 = arith.addf %28, %29 : vector<1x256xf32>
    %cst_5 = arith.constant 2.000000e+00 : f32
    %31 = vector.broadcast %cst_5 : f32 to vector<1x256xf32>
    %32 = arith.mulf %31, %30 : vector<1x256xf32>
    %33 = arith.mulf %32, %12 : vector<1x256xf32>
    %c2 = arith.constant 2 : index
    %c0_6 = arith.constant 0 : index
    %34 = vector.load %arg1[%c2, %c0_6] : memref<9x256xf32, #tpu.memory_space<vmem>>, vector<1x256xf32>
    tpu.vector_store %arg1[%c2, %c0_6], %33 {strides = array<i32>} : memref<9x256xf32, #tpu.memory_space<vmem>>, vector<1x256xf32>,
    %35 = arith.mulf %2, %3 : vector<1x256xf32>
    %36 = arith.mulf %1, %4 : vector<1x256xf32>
    %37 = arith.addf %35, %36 : vector<1x256xf32>
    %cst_7 = arith.constant 2.000000e+00 : f32
    %38 = vector.broadcast %cst_7 : f32 to vector<1x256xf32>
    %39 = arith.mulf %38, %37 : vector<1x256xf32>
    %40 = arith.mulf %39, %12 : vector<1x256xf32>
    %c3 = arith.constant 3 : index
    %c0_8 = arith.constant 0 : index
    %41 = vector.load %arg1[%c3, %c0_8] : memref<9x256xf32, #tpu.memory_space<vmem>>, vector<1x256xf32>
    tpu.vector_store %arg1[%c3, %c0_8], %40 {strides = array<i32>} : memref<9x256xf32, #tpu.memory_space<vmem>>, vector<1x256xf32>,
    %42 = arith.mulf %2, %2 : vector<1x256xf32>
    %43 = arith.mulf %4, %4 : vector<1x256xf32>
    %44 = arith.addf %42, %43 : vector<1x256xf32>
    %cst_9 = arith.constant 2.000000e+00 : f32
    %45 = vector.broadcast %cst_9 : f32 to vector<1x256xf32>
    %46 = arith.mulf %45, %44 : vector<1x256xf32>
    %47 = arith.subf %11, %46 : vector<1x256xf32>
    %48 = arith.mulf %47, %12 : vector<1x256xf32>
    %c4 = arith.constant 4 : index
    %c0_10 = arith.constant 0 : index
    %49 = vector.load %arg1[%c4, %c0_10] : memref<9x256xf32, #tpu.memory_space<vmem>>, vector<1x256xf32>
    tpu.vector_store %arg1[%c4, %c0_10], %48 {strides = array<i32>} : memref<9x256xf32, #tpu.memory_space<vmem>>, vector<1x256xf32>,
    %50 = arith.mulf %3, %4 : vector<1x256xf32>
    %51 = arith.mulf %1, %2 : vector<1x256xf32>
    %52 = arith.subf %50, %51 : vector<1x256xf32>
    %cst_11 = arith.constant 2.000000e+00 : f32
    %53 = vector.broadcast %cst_11 : f32 to vector<1x256xf32>
    %54 = arith.mulf %53, %52 : vector<1x256xf32>
    %55 = arith.mulf %54, %12 : vector<1x256xf32>
    %c5 = arith.constant 5 : index
    %c0_12 = arith.constant 0 : index
    %56 = vector.load %arg1[%c5, %c0_12] : memref<9x256xf32, #tpu.memory_space<vmem>>, vector<1x256xf32>
    tpu.vector_store %arg1[%c5, %c0_12], %55 {strides = array<i32>} : memref<9x256xf32, #tpu.memory_space<vmem>>, vector<1x256xf32>,
    %57 = arith.mulf %2, %4 : vector<1x256xf32>
    %58 = arith.mulf %1, %3 : vector<1x256xf32>
    %59 = arith.subf %57, %58 : vector<1x256xf32>
    %cst_13 = arith.constant 2.000000e+00 : f32
    %60 = vector.broadcast %cst_13 : f32 to vector<1x256xf32>
    %61 = arith.mulf %60, %59 : vector<1x256xf32>
    %62 = arith.mulf %61, %12 : vector<1x256xf32>
    %c6 = arith.constant 6 : index
    %c0_14 = arith.constant 0 : index
    %63 = vector.load %arg1[%c6, %c0_14] : memref<9x256xf32, #tpu.memory_space<vmem>>, vector<1x256xf32>
    tpu.vector_store %arg1[%c6, %c0_14], %62 {strides = array<i32>} : memref<9x256xf32, #tpu.memory_space<vmem>>, vector<1x256xf32>,
    %64 = arith.mulf %3, %4 : vector<1x256xf32>
    %65 = arith.mulf %1, %2 : vector<1x256xf32>
    %66 = arith.addf %64, %65 : vector<1x256xf32>
    %cst_15 = arith.constant 2.000000e+00 : f32
    %67 = vector.broadcast %cst_15 : f32 to vector<1x256xf32>
    %68 = arith.mulf %67, %66 : vector<1x256xf32>
    %69 = arith.mulf %68, %12 : vector<1x256xf32>
    %c7 = arith.constant 7 : index
    %c0_16 = arith.constant 0 : index
    %70 = vector.load %arg1[%c7, %c0_16] : memref<9x256xf32, #tpu.memory_space<vmem>>, vector<1x256xf32>
    tpu.vector_store %arg1[%c7, %c0_16], %69 {strides = array<i32>} : memref<9x256xf32, #tpu.memory_space<vmem>>, vector<1x256xf32>,
    %71 = arith.mulf %2, %2 : vector<1x256xf32>
    %72 = arith.mulf %3, %3 : vector<1x256xf32>
    %73 = arith.addf %71, %72 : vector<1x256xf32>
    %cst_17 = arith.constant 2.000000e+00 : f32
    %74 = vector.broadcast %cst_17 : f32 to vector<1x256xf32>
    %75 = arith.mulf %74, %73 : vector<1x256xf32>
    %76 = arith.subf %11, %75 : vector<1x256xf32>
    %77 = arith.mulf %76, %12 : vector<1x256xf32>
    %c8 = arith.constant 8 : index
    %c0_18 = arith.constant 0 : index
    %78 = vector.load %arg1[%c8, %c0_18] : memref<9x256xf32, #tpu.memory_space<vmem>>, vector<1x256xf32>
    tpu.vector_store %arg1[%c8, %c0_18], %77 {strides = array<i32>} : memref<9x256xf32, #tpu.memory_space<vmem>>, vector<1x256xf32>,
    return
  }
}

</mosaic_0001>

<bundles_post_ra>
// kernel: tpu_custom_call.1
= control target key start
LH: loop header
LB: loop body
LE: loop exit
PB: predicated region body
PF: predicated region fallthrough
CT: control target
= control target key end

     0   :  { %6 = vsyncpa [#allocation3], 0  ;;  %s429_s0 = inlined_call_operand.hbm [shape: f32[4,256], index: 0, kind: input, shape index: {}]   ;;  %s430_s1 = inlined_call_operand.hbm [shape: f32[9,256], index: 1, kind: output, shape index: {}]  }
   0x1   :  { %7 = vsyncpa [#allocation4], 0  ;;  %s368_s6 = smov [#allocation2]   ;;  %s320_s10 = scalar_lea.hbm %s429_s0, 128 }
   0x2   :  { %s14_s7 = sshll.u32 %s368_s6, 4  ;;  %p321_p0 = scmp.ne.s32.totalorder %s429_s0, %s320_s10  ;;  %s15_s7 = int_to_ptr.vmem [resolvable:$true] %s14_s7 }
   0x3   :  { %p324_p1 = scmp.lt.u32.totalorder %s320_s10, %s429_s0 }
   0x5   :  { %p326_p2 = pnand %p324_p1, %p321_p0 }
   0x7   :  { %329 = shalt.err (!%p326_p2)
}
   0x8   :  { %s330_s15 = scalar_lea.vmem %s15_s7, 128  ;;  %p335_p4 = scmp.lt.s32.totalorder %s15_s7, %s15_s7 }
   0x9   :  { %p331_p3 = scmp.ne.s32.totalorder %s15_s7, %s330_s15  ;;  %p336_p5 = scmp.lt.s32.totalorder %s330_s15, %s330_s15 }
   0xb   :  { %p337_p6 = por %p336_p5, %p335_p4 }
   0xd   :  { %p338_p7 = pnand %p337_p6, %p331_p3 }
   0xf   :  { %341 = shalt.err (!%p338_p7)
}
  0x10   :  { %17 = dma.hbm_to_vmem [thread:$0]  %s429_s0, 128, %s15_s7, [#allocation3]  }
  0x11   :  { %364 = dma.done.wait [#allocation3], 128  }
  0x12   :  { %365 = vsyncadd [#allocation3], 4294967168  ;;  %v21_v0 = vld [vmem:[#allocation2] sm:$0xff]  ;;  %v369_v18 = vmov 1966171168   ;;  %v54_v20 = vlaneseq  ;;  %s370_s0 = smov [#allocation5]  }
  0x13   :  { %v22_v1 = vmul.f32 %v21_v0, %v21_v0  ;;  %v308_v8 = vrot.slane %v21_v0, 9  ;;  %v309_v9 = vrot.slane %v21_v0, 11  ;;  %v310_v10 = vrot.slane %v21_v0, 10  ;;  %s293_s18 = sshll.u32 %s370_s0, 4  ;;  %s294_s18 = int_to_ptr.vmem [resolvable:$true] %s293_s18 }
  0x14   :  { %v52_v19 = vunpack.c.l.s4 %v369_v18  ;;  %v55_v27 = vshrl.u32 %v54_v20, 7  ;;  %vm395_vm2 = vcmp.lt.s32.totalorder %v54_v20, 256  ;;  %s342_s19 = scalar_lea.vmem %s294_s18, 512  ;;  %p347_p9 = scmp.lt.s32.totalorder %s294_s18, %s294_s18 }
  0x15   :  { %v305_v2 = vrot.slane %v22_v1, 9  ;;  %v28_v3 = vrot.slane %v22_v1, 6  ;;  %v306_v6 = vrot.slane %v22_v1, 11  ;;  %v76_v13 = vmul.f32 %v308_v8, %v21_v0  ;;  %p343_p8 = scmp.ne.s32.totalorder %s294_s18, %s342_s19  ;;  %p348_p10 = scmp.lt.s32.totalorder %s342_s19, %s342_s19 }
  0x16   :  { %v80_v14 = vmul.f32 %v309_v9, %v21_v0  ;;  %v113_v15 = vmul.f32 %v310_v10, %v21_v0  ;;  %v53_v26 = vunpack.c.0.s8 %v52_v19 }
  0x17   :  { %v27_v4 = vadd.f32 %v305_v2, %v22_v1  ;;  %v29_v5 = vrot.slane %v28_v3, 4  ;;  %v191_v23 = vrot.slane %v76_v13, 6  ;;  %p349_p11 = por %p348_p10, %p347_p9 }
  0x18   :  { %v82_v21 = vrot.slane %v80_v14, 7  ;;  %v115_v22 = vrot.slane %v113_v15, 7  ;;  %v56_v40 = vsub.s32 %v53_v26, %v55_v27 }
  0x19   :  { %v31_v7 = vadd.f32 %v29_v5, %v27_v4  ;;  %v163_v12 = vadd.f32 %v29_v5, %v22_v1  ;;  %v43_v16 = vmul.f32 2.0, %v27_v4  ;;  %v193_v32 = vsub.f32 %v76_v13, %v191_v23  ;;  %p350_p12 = pnand %p349_p11, %p343_p8 }
  0x1a   :  { %v84_v29 = vsub.f32 %v76_v13, %v82_v21  ;;  %v117_v30 = vadd.f32 %v115_v22, %v113_v15  ;;  %v140_v31 = vadd.f32 %v82_v21, %v76_v13  ;;  %v218_v35 = vsub.f32 %v113_v15, %v115_v22 }
  0x1b   :  { %v35_v11 = vadd.f32 %v306_v6, %v31_v7  ;;  %v164_v17 = vmul.f32 2.0, %v163_v12  ;;  %v307_v24 = vrot.slane %v43_v16, 10  ;;  %v312_v28 = vrot.slane %v43_v16, 9 }
  0x1c   :  { %v241_v36 = vadd.f32 %v191_v23, %v76_v13  ;;  %v85_v43 = vmul.f32 2.0, %v84_v29  ;;  %v118_v44 = vmul.f32 2.0, %v117_v30  ;;  %v141_v45 = vmul.f32 2.0, %v140_v31 }
  0x1d   :  { %318 = vrsqrt.f32 %v35_v11  ;;  %v311_v25 = vrot.slane %v164_v17, 9  ;;  %vm38_vm0 = vcmp.eq.f32.partialorder %v35_v11, inf  ;;  %v41_v34 = vand.u32 2147483648, %v35_v11 }
  0x1e   :  { %vm40_vm1 = vcmp.eq.f32.partialorder %v35_v11, 0.0  ;;  %v48_v38 = vsub.f32 %v35_v11, %v307_v24  ;;  %v267_v41 = vsub.f32 %v35_v11, %v312_v28  ;;  %v194_v47 = vmul.f32 2.0, %v193_v32 }
  0x1f   :  { %v169_v39 = vsub.f32 %v35_v11, %v311_v25  ;;  %v219_v48 = vmul.f32 2.0, %v218_v35  ;;  %v242_v49 = vmul.f32 2.0, %v241_v36 }
  0x27   :  { %v319_v33 = vpop.eup %318 }
  0x28   :  { %v37_v37 = vmul.f32 %v319_v33, %v35_v11 }
  0x2a   :  { %v39_v42 = vsel %vm38_vm0, %v35_v11, %v37_v37 }
  0x2b   :  { %v42_v46 = vsel %vm40_vm1, %v41_v34, %v39_v42 }
  0x2c   :  { %v49_v50 = vmul.f32 %v48_v38, %v42_v46  ;;  %v87_v51 = vrot.slane %v42_v46, 7  ;;  %v170_v52 = vmul.f32 %v169_v39, %v42_v46  ;;  %v195_v53 = vrot.slane %v42_v46, 6 }
  0x2d   :  { %v268_v55 = vmul.f32 %v267_v41, %v42_v46 }
  0x2e   :  { %v57_v56 = vrot.slane %v49_v50, %v56_v40  ;;  %v89_v57 = vmul.f32 %v87_v51, %v85_v43  ;;  %v119_v58 = vmul.f32 %v118_v44, %v87_v51  ;;  %v142_v59 = vmul.f32 %v141_v45, %v87_v51 }
  0x2f   :  { %v178_v60 = vrot.slane %v170_v52, %v56_v40  ;;  %v197_v61 = vmul.f32 %v195_v53, %v194_v47  ;;  %v220_v62 = vmul.f32 %v219_v48, %v87_v51  ;;  %v243_v63 = vmul.f32 %v242_v49, %v195_v53 }
  0x30   :  { %v64_v0 = vrot.slane %v57_v56, %v56_v40  ;;  %v97_v1 = vrot.slane %v89_v57, %v56_v40  ;;  %v127_v2 = vrot.slane %v119_v58, %v56_v40  ;;  %v150_v3 = vrot.slane %v142_v59, %v56_v40 }
  0x31   :  { %v185_v4 = vrot.slane %v178_v60, %v56_v40  ;;  %v205_v5 = vrot.slane %v197_v61, %v56_v40  ;;  %v228_v6 = vrot.slane %v220_v62, %v56_v40  ;;  %v251_v7 = vrot.slane %v243_v63, %v56_v40 }
  0x32   :  { %70 = vst.msk [vmem:[#allocation5] ss:$8 sm:$0x3] %vm395_vm2, %v64_v0  ;;  %v98_v8 = vcombine.high %v97_v1, %v97_v1  ;;  %v128_v9 = vcombine.high %v127_v2, %v127_v2  ;;  %v151_v10 = vcombine.high %v150_v3, %v150_v3  ;;  %v276_v11 = vrot.slane %v268_v55, %v56_v40 }
  0x33   :  { %188 = vst.msk [vmem:[#allocation5 + $0x4] ss:$8 sm:$0x3] %vm395_vm2, %v185_v4  ;;  %v212_v12 = vrot.slane %v205_v5, %v56_v40  ;;  %v229_v13 = vcombine.high %v228_v6, %v228_v6  ;;  %v258_v14 = vrot.slane %v251_v7, %v56_v40 }
  0x34   :  { %v105_v15 = vrot.slane %v98_v8, %v56_v40  ;;  %v135_v16 = vrot.slane %v128_v9, %v56_v40  ;;  %v158_v17 = vrot.slane %v151_v10, %v56_v40  ;;  %v283_v18 = vrot.slane %v276_v11, %v56_v40 }
  0x35   :  { %v213_v19 = vcombine.high %v212_v12, %v212_v12  ;;  %v236_v20 = vrot.slane %v229_v13, %v56_v40  ;;  %v259_v21 = vcombine.high %v258_v14, %v258_v14 }
  0x36   :  { %108 = vst.msk [vmem:[#allocation5 + $0x1] ss:$8 sm:$0x3] %vm395_vm2, %v105_v15  ;;  %138 = vst.msk [vmem:[#allocation5 + $0x2] ss:$8 sm:$0x3] %vm395_vm2, %v135_v16 }
  0x37   :  { %161 = vst.msk [vmem:[#allocation5 + $0x3] ss:$8 sm:$0x3] %vm395_vm2, %v158_v17  ;;  %286 = vst.msk [vmem:[#allocation5 + $0x10] ss:$8 sm:$0x3] %vm395_vm2, %v283_v18 }
  0x38   :  { %216 = vst.msk [vmem:[#allocation5 + $0x5] ss:$8 sm:$0x3] %vm395_vm2, %v213_v19  ;;  %239 = vst.msk [vmem:[#allocation5 + $0x6] ss:$8 sm:$0x3] %vm395_vm2, %v236_v20 }
  0x39   :  { %262 = vst.msk [vmem:[#allocation5 + $0x7] ss:$8 sm:$0x3] %vm395_vm2, %v259_v21 }
  0x3a   :  { %353 = shalt.err (!%p350_p12)
}
  0x3b   :  { %s354_s22 = scalar_lea.hbm %s430_s1, 512 }
  0x3c   :  { %p355_p13 = scmp.ne.s32.totalorder %s430_s1, %s354_s22  ;;  %p358_p0 = scmp.lt.u32.totalorder %s354_s22, %s430_s1 }
  0x3e   :  { %p360_p1 = pnand %p358_p0, %p355_p13 }
  0x40   :  { %363 = shalt.err (!%p360_p1)
}
  0x41   :  { %s371_s27 = smov 256   ;;  %s372_s28 = smov 16  }
  0x42   :  { %299 = dma.vmem_to_hbm [thread:$0]  %s294_s18, 512, %s430_s1, [#allocation4], %s371_s27, %s371_s27, %s372_s28  }
  0x43   :  { %366 = dma.done.wait [#allocation4], 512  }
  0x44   :  { %367 = vsyncadd [#allocation4], 4294966784 }
  0x45   :  { %303 = vsyncpa [#allocation3], 1 }
  0x46   :  { %304 = vsyncpa [#allocation4], 1 }

</bundles_post_ra>
